<compile_context>
chip_gen: v7x
topology: tpu7x:2x2x1
jax: 0.10.0
libtpu: 0.0.40
codegen_flags: <defaults>
</compile_context>

<pallas_src>
import jax
import jax.numpy as jnp
from jax import lax
from jax.experimental import pallas as pl
from jax.experimental.pallas import tpu as pltpu  # noqa: F401  (TPU backend assumed)

# ----- model dims (small, consistent with a tiny T5 config) -----
B, S, D = 2, 8, 32          # batch, seq, d_model
H, DK = 4, 8                # num_heads, d_kv
INNER = H * DK              # inner_dim = 32
DFF = 64                    # d_ff
EPS = 1e-6                  # layer_norm_epsilon
N = B * S                   # flattened token count = 16

# ----- packed parameter slab layout (all sections start on 8-row boundaries,
#       lane width 128 -> no tile-boundary-crossing views inside the kernel) --
SLAB_W   = 128
ROW_LN   = 0                      # row 0: ln1, row 1: ln2        (cols 0:D)
ROW_WQKV = 8                      # (D, 3*INNER) = (32, 96)       (cols 0:96)
ROW_WO   = ROW_WQKV + D           # 40: (INNER, D) = (32, 32)     (cols 0:32)
ROW_WI   = ROW_WO + INNER         # 72: (D, DFF)   = (32, 64)     (cols 0:64)
ROW_WOF  = ROW_WI + D             # 104: (DFF, D)  = (64, 32)     (cols 0:32)
ROW_MASK = ROW_WOF + DFF          # 168: (N, N)    = (16, 16)     (cols 0:16)
SLAB_ROWS = ROW_MASK + N          # 184 rows (multiple of 8)


def _rms_norm(x_f32, w_f32):
    """T5LayerNorm: x * rsqrt(mean(x^2) + eps) * weight (no bias, no mean)."""
    var = jnp.mean(x_f32 * x_f32, axis=-1, keepdims=True)
    return x_f32 * lax.rsqrt(var + EPS) * w_f32


# ------------------ fused kernel: self-attention + MTALayers(FF) ------------------
def fused_block_kernel(x_ref, slab_ref, o_ref):
    x = x_ref[...].astype(jnp.float32)                          # (N, D) whole batch

    # Static views into the packed parameter slab (zero-cost slices).
    ln1 = slab_ref[ROW_LN:ROW_LN + 1, :D]                       # (1, D)
    ln2 = slab_ref[ROW_LN + 1:ROW_LN + 2, :D]                   # (1, D)
    mask_bias = slab_ref[ROW_MASK:ROW_MASK + N, :N]             # (N, N), precomputed

    # ---------------- T5LayerSelfAttention ----------------
    xn = _rms_norm(x, ln1)                                      # (N, D)
    # Fused QKV projection: one MXU op instead of three.
    qkv = jnp.dot(xn, slab_ref[ROW_WQKV:ROW_WQKV + D, :3 * INNER],
                  preferred_element_type=jnp.float32)           # (N, 3*INNER)
    q = qkv[:, 0:INNER]
    k = qkv[:, INNER:2 * INNER]
    v = qkv[:, 2 * INNER:3 * INNER]

    dn = (((1,), (1,)), ((), ()))                               # contract last dims (no .T)
    ctx_heads = []
    for h in range(H):                                          # static 4-way unroll
        qh = q[:, h * DK:(h + 1) * DK]                          # (N, DK)
        kh = k[:, h * DK:(h + 1) * DK]
        vh = v[:, h * DK:(h + 1) * DK]
        scores = lax.dot_general(qh, kh, dn,
                                 preferred_element_type=jnp.float32)  # (N, N)
        scores = scores + mask_bias                             # block-diagonal batch mask
        scores = scores - jnp.max(scores, axis=-1, keepdims=True)
        p = jnp.exp(scores)
        p = p * pl.reciprocal(jnp.sum(p, axis=-1, keepdims=True), approx=True)
        ctx_heads.append(jnp.dot(p, vh, preferred_element_type=jnp.float32))
    ctx = jnp.concatenate(ctx_heads, axis=-1)                   # (N, INNER)
    # One well-shaped (N,32)@(32,32) matmul against the whole Wo.
    attn = jnp.dot(ctx, slab_ref[ROW_WO:ROW_WO + INNER, :D],
                   preferred_element_type=jnp.float32)
    h1 = x + attn                                               # residual add

    # ---------------- MTALayers (T5 DenseReluDense) ----------------
    h1n = _rms_norm(h1, ln2)
    mid = jnp.maximum(
        jnp.dot(h1n, slab_ref[ROW_WI:ROW_WI + D, :DFF],
                preferred_element_type=jnp.float32), 0.0)       # ReLU
    y = jnp.dot(mid, slab_ref[ROW_WOF:ROW_WOF + DFF, :D],
                preferred_element_type=jnp.float32)
    o_ref[...] = (h1 + y).astype(o_ref.dtype)                   # residual add


# ------------------------------- wrapper ----------------------------------------
def pack_params(params):
    """Pack all weights + the block-diagonal mask into one padded f32 slab.

    Done once outside the forward; removes 8 tiny per-call operand DMAs and the
    in-kernel iota/where mask construction from the launch path.
    """
    slab = jnp.zeros((SLAB_ROWS, SLAB_W), jnp.float32)
    slab = slab.at[ROW_LN, :D].set(params["ln1"].reshape(D))
    slab = slab.at[ROW_LN + 1, :D].set(params["ln2"].reshape(D))
    wqkv = jnp.concatenate([params["wq"], params["wk"], params["wv"]], axis=1)
    slab = slab.at[ROW_WQKV:ROW_WQKV + D, :3 * INNER].set(wqkv)
    slab = slab.at[ROW_WO:ROW_WO + INNER, :D].set(params["wo"])
    slab = slab.at[ROW_WI:ROW_WI + D, :DFF].set(params["wi"])
    slab = slab.at[ROW_WOF:ROW_WOF + DFF, :D].set(params["wof"])
    # Block-diagonal additive mask: token i attends only within its own batch
    # element (this is what replaces a per-batch grid).
    row_b = jnp.arange(N)[:, None] // S
    col_b = jnp.arange(N)[None, :] // S
    mask = jnp.where(row_b == col_b, 0.0, -1e30).astype(jnp.float32)
    slab = slab.at[ROW_MASK:ROW_MASK + N, :N].set(mask)
    return slab


@jax.jit
def mta_block2_forward(hidden_states, param_slab):
    """MTABlock2.forward for the encoder case; returns (hidden_states,)[0]."""
    x2d = hidden_states.reshape(N, D)                           # whole batch, one slab
    out2d = pl.pallas_call(
        fused_block_kernel,
        out_shape=jax.ShapeDtypeStruct((N, D), hidden_states.dtype),
        # gridless single invocation; default BlockSpecs load each full array
        # into VMEM (total resident data << VMEM on v5e/v6e/v7x -> no tiling).
    )(x2d, param_slab)
    return out2d.reshape(B, S, D)


# ---------------------------- pure-JAX reference ---------------------------------
def reference_forward(x, params):
    def rms(v, w):
        var = jnp.mean(v.astype(jnp.float32) ** 2, axis=-1, keepdims=True)
        return v.astype(jnp.float32) * lax.rsqrt(var + EPS) * w

    xn = rms(x, params["ln1"][0])
    q = (xn @ params["wq"]).reshape(B, S, H, DK).transpose(0, 2, 1, 3)
    k = (xn @ params["wk"]).reshape(B, S, H, DK).transpose(0, 2, 1, 3)
    v = (xn @ params["wv"]).reshape(B, S, H, DK).transpose(0, 2, 1, 3)
    scores = jnp.einsum("bhqd,bhkd->bhqk", q, k)                # zero position bias
    p = jax.nn.softmax(scores, axis=-1)
    ctx = jnp.einsum("bhqk,bhkd->bhqd", p, v).transpose(0, 2, 1, 3).reshape(B, S, H * DK)
    h1 = x + ctx @ params["wo"]

    hn = rms(h1, params["ln2"][0])
    h2 = h1 + jnp.maximum(hn @ params["wi"], 0.0) @ params["wof"]
    return h2


# ------------------------------------ main ----------------------------------------
if __name__ == "__main__":
    key = jax.random.PRNGKey(0)
    ks = jax.random.split(key, 8)
    scale = 0.05
    params = {
        "ln1": jnp.ones((1, D), jnp.float32),
        "ln2": jnp.ones((1, D), jnp.float32),
        "wq": scale * jax.random.normal(ks[0], (D, INNER), jnp.float32),
        "wk": scale * jax.random.normal(ks[1], (D, INNER), jnp.float32),
        "wv": scale * jax.random.normal(ks[2], (D, INNER), jnp.float32),
        "wo": scale * jax.random.normal(ks[3], (INNER, D), jnp.float32),
        "wi": scale * jax.random.normal(ks[4], (D, DFF), jnp.float32),
        "wof": scale * jax.random.normal(ks[5], (DFF, D), jnp.float32),
    }

    x = jax.random.normal(ks[6], (B, S, D), jnp.float32)

    param_slab = pack_params(params)                 # one-time host-side packing
    out = mta_block2_forward(x, param_slab)
    out = jax.block_until_ready(out)

    ref = reference_forward(x, params)
    assert out.shape == (B, S, D)
    # approx-reciprocal softmax normalization -> slightly loosened tolerance
    assert jnp.allclose(out, ref, atol=1e-3, rtol=1e-3), "mismatch vs JAX reference"

    print("KERNEL_OK")
</pallas_src>

<mosaic_0001>
module attributes {stable_mosaic.version = 11 : i64} {
  func.func @fused_block_kernel(%arg0: memref<16x32xf32, #tpu.memory_space<vmem>>, %arg1: memref<184x128xf32, #tpu.memory_space<vmem>>, %arg2: memref<16x32xf32, #tpu.memory_space<vmem>>) attributes {dimension_semantics = [], scalar_prefetch = 0 : i64, scratch_operands = 0 : i64, tpu.core_type = #tpu.core_type<tc>} {
    %c0 = arith.constant 0 : index
    %c0_0 = arith.constant 0 : index
    %0 = vector.load %arg0[%c0, %c0_0] : memref<16x32xf32, #tpu.memory_space<vmem>>, vector<16x32xf32>
    %c0_1 = arith.constant 0 : index
    %c0_2 = arith.constant 0 : index
    %1 = vector.load %arg1[%c0_1, %c0_2] : memref<184x128xf32, #tpu.memory_space<vmem>>, vector<1x32xf32>
    %c1 = arith.constant 1 : index
    %c0_3 = arith.constant 0 : index
    %2 = vector.load %arg1[%c1, %c0_3] : memref<184x128xf32, #tpu.memory_space<vmem>>, vector<1x32xf32>
    %c168 = arith.constant 168 : index
    %c0_4 = arith.constant 0 : index
    %3 = vector.load %arg1[%c168, %c0_4] : memref<184x128xf32, #tpu.memory_space<vmem>>, vector<16x16xf32>
    %4 = arith.mulf %0, %0 : vector<16x32xf32>
    %cst = arith.constant dense<0.000000e+00> : vector<16xf32>
    %5 = vector.multi_reduction <add>, %4, %cst [1] : vector<16x32xf32> to vector<16xf32>
    %6 = vector.shape_cast %5 : vector<16xf32> to vector<16x1xf32>
    %cst_5 = arith.constant 3.200000e+01 : f32
    %7 = vector.broadcast %cst_5 : f32 to vector<16x1xf32>
    %8 = arith.divf %6, %7 : vector<16x1xf32>
    %cst_6 = arith.constant 9.99999997E-7 : f32
    %9 = vector.broadcast %cst_6 : f32 to vector<16x1xf32>
    %10 = arith.addf %8, %9 : vector<16x1xf32>
    %11 = math.rsqrt %10 : vector<16x1xf32>
    %12 = vector.broadcast %11 : vector<16x1xf32> to vector<16x32xf32>
    %13 = arith.mulf %0, %12 : vector<16x32xf32>
    %14 = vector.broadcast %1 : vector<1x32xf32> to vector<16x32xf32>
    %15 = arith.mulf %13, %14 : vector<16x32xf32>
    %c8 = arith.constant 8 : index
    %c0_7 = arith.constant 0 : index
    %16 = vector.load %arg1[%c8, %c0_7] : memref<184x128xf32, #tpu.memory_space<vmem>>, vector<32x96xf32>
    %cst_8 = arith.constant dense<0.000000e+00> : vector<16x96xf32>
    %17 = tpu.matmul %15, %16, %cst_8 {dimension_numbers = #tpu.dot_dimension_numbers<[1], [0], [0], [1], [0, 0, 1, 1], [], []>} : vector<16x32xf32>, vector<32x96xf32>, vector<16x96xf32> -> vector<16x96xf32>
    %18 = vector.extract_strided_slice %17 {offsets = [0, 0], sizes = [16, 32], strides = [1, 1]} : vector<16x96xf32> to vector<16x32xf32>
    %19 = vector.extract_strided_slice %17 {offsets = [0, 32], sizes = [16, 32], strides = [1, 1]} : vector<16x96xf32> to vector<16x32xf32>
    %20 = vector.extract_strided_slice %17 {offsets = [0, 64], sizes = [16, 32], strides = [1, 1]} : vector<16x96xf32> to vector<16x32xf32>
    %21 = vector.extract_strided_slice %18 {offsets = [0, 0], sizes = [16, 8], strides = [1, 1]} : vector<16x32xf32> to vector<16x8xf32>
    %22 = vector.extract_strided_slice %19 {offsets = [0, 0], sizes = [16, 8], strides = [1, 1]} : vector<16x32xf32> to vector<16x8xf32>
    %23 = vector.extract_strided_slice %20 {offsets = [0, 0], sizes = [16, 8], strides = [1, 1]} : vector<16x32xf32> to vector<16x8xf32>
    %cst_9 = arith.constant dense<0.000000e+00> : vector<16x16xf32>
    %24 = tpu.matmul %21, %22, %cst_9 {dimension_numbers = #tpu.dot_dimension_numbers<[1], [1], [0], [0], [0, 0, 1, 0], [], []>} : vector<16x8xf32>, vector<16x8xf32>, vector<16x16xf32> -> vector<16x16xf32>
    %25 = arith.addf %24, %3 : vector<16x16xf32>
    %cst_10 = arith.constant dense<0xFF800000> : vector<16xf32>
    %26 = vector.multi_reduction <maximumf>, %25, %cst_10 [1] : vector<16x16xf32> to vector<16xf32>
    %27 = vector.shape_cast %26 : vector<16xf32> to vector<16x1xf32>
    %28 = vector.broadcast %27 : vector<16x1xf32> to vector<16x16xf32>
    %29 = arith.subf %25, %28 : vector<16x16xf32>
    %30 = math.exp %29 : vector<16x16xf32>
    %cst_11 = arith.constant dense<0.000000e+00> : vector<16xf32>
    %31 = vector.multi_reduction <add>, %30, %cst_11 [1] : vector<16x16xf32> to vector<16xf32>
    %32 = vector.shape_cast %31 : vector<16xf32> to vector<16x1xf32>
    %33 = tpu.reciprocal %32 {approx = true} : vector<16x1xf32> -> vector<16x1xf32>
    %34 = vector.broadcast %33 : vector<16x1xf32> to vector<16x16xf32>
    %35 = arith.mulf %30, %34 : vector<16x16xf32>
    %cst_12 = arith.constant dense<0.000000e+00> : vector<16x8xf32>
    %36 = tpu.matmul %35, %23, %cst_12 {dimension_numbers = #tpu.dot_dimension_numbers<[1], [0], [0], [1], [0, 0, 1, 1], [], []>} : vector<16x16xf32>, vector<16x8xf32>, vector<16x8xf32> -> vector<16x8xf32>
    %37 = vector.extract_strided_slice %18 {offsets = [0, 8], sizes = [16, 8], strides = [1, 1]} : vector<16x32xf32> to vector<16x8xf32>
    %38 = vector.extract_strided_slice %19 {offsets = [0, 8], sizes = [16, 8], strides = [1, 1]} : vector<16x32xf32> to vector<16x8xf32>
    %39 = vector.extract_strided_slice %20 {offsets = [0, 8], sizes = [16, 8], strides = [1, 1]} : vector<16x32xf32> to vector<16x8xf32>
    %cst_13 = arith.constant dense<0.000000e+00> : vector<16x16xf32>
    %40 = tpu.matmul %37, %38, %cst_13 {dimension_numbers = #tpu.dot_dimension_numbers<[1], [1], [0], [0], [0, 0, 1, 0], [], []>} : vector<16x8xf32>, vector<16x8xf32>, vector<16x16xf32> -> vector<16x16xf32>
    %41 = arith.addf %40, %3 : vector<16x16xf32>
    %cst_14 = arith.constant dense<0xFF800000> : vector<16xf32>
    %42 = vector.multi_reduction <maximumf>, %41, %cst_14 [1] : vector<16x16xf32> to vector<16xf32>
    %43 = vector.shape_cast %42 : vector<16xf32> to vector<16x1xf32>
    %44 = vector.broadcast %43 : vector<16x1xf32> to vector<16x16xf32>
    %45 = arith.subf %41, %44 : vector<16x16xf32>
    %46 = math.exp %45 : vector<16x16xf32>
    %cst_15 = arith.constant dense<0.000000e+00> : vector<16xf32>
    %47 = vector.multi_reduction <add>, %46, %cst_15 [1] : vector<16x16xf32> to vector<16xf32>
    %48 = vector.shape_cast %47 : vector<16xf32> to vector<16x1xf32>
    %49 = tpu.reciprocal %48 {approx = true} : vector<16x1xf32> -> vector<16x1xf32>
    %50 = vector.broadcast %49 : vector<16x1xf32> to vector<16x16xf32>
    %51 = arith.mulf %46, %50 : vector<16x16xf32>
    %cst_16 = arith.constant dense<0.000000e+00> : vector<16x8xf32>
    %52 = tpu.matmul %51, %39, %cst_16 {dimension_numbers = #tpu.dot_dimension_numbers<[1], [0], [0], [1], [0, 0, 1, 1], [], []>} : vector<16x16xf32>, vector<16x8xf32>, vector<16x8xf32> -> vector<16x8xf32>
    %53 = vector.extract_strided_slice %18 {offsets = [0, 16], sizes = [16, 8], strides = [1, 1]} : vector<16x32xf32> to vector<16x8xf32>
    %54 = vector.extract_strided_slice %19 {offsets = [0, 16], sizes = [16, 8], strides = [1, 1]} : vector<16x32xf32> to vector<16x8xf32>
    %55 = vector.extract_strided_slice %20 {offsets = [0, 16], sizes = [16, 8], strides = [1, 1]} : vector<16x32xf32> to vector<16x8xf32>
    %cst_17 = arith.constant dense<0.000000e+00> : vector<16x16xf32>
    %56 = tpu.matmul %53, %54, %cst_17 {dimension_numbers = #tpu.dot_dimension_numbers<[1], [1], [0], [0], [0, 0, 1, 0], [], []>} : vector<16x8xf32>, vector<16x8xf32>, vector<16x16xf32> -> vector<16x16xf32>
    %57 = arith.addf %56, %3 : vector<16x16xf32>
    %cst_18 = arith.constant dense<0xFF800000> : vector<16xf32>
    %58 = vector.multi_reduction <maximumf>, %57, %cst_18 [1] : vector<16x16xf32> to vector<16xf32>
    %59 = vector.shape_cast %58 : vector<16xf32> to vector<16x1xf32>
    %60 = vector.broadcast %59 : vector<16x1xf32> to vector<16x16xf32>
    %61 = arith.subf %57, %60 : vector<16x16xf32>
    %62 = math.exp %61 : vector<16x16xf32>
    %cst_19 = arith.constant dense<0.000000e+00> : vector<16xf32>
    %63 = vector.multi_reduction <add>, %62, %cst_19 [1] : vector<16x16xf32> to vector<16xf32>
    %64 = vector.shape_cast %63 : vector<16xf32> to vector<16x1xf32>
    %65 = tpu.reciprocal %64 {approx = true} : vector<16x1xf32> -> vector<16x1xf32>
    %66 = vector.broadcast %65 : vector<16x1xf32> to vector<16x16xf32>
    %67 = arith.mulf %62, %66 : vector<16x16xf32>
    %cst_20 = arith.constant dense<0.000000e+00> : vector<16x8xf32>
    %68 = tpu.matmul %67, %55, %cst_20 {dimension_numbers = #tpu.dot_dimension_numbers<[1], [0], [0], [1], [0, 0, 1, 1], [], []>} : vector<16x16xf32>, vector<16x8xf32>, vector<16x8xf32> -> vector<16x8xf32>
    %69 = vector.extract_strided_slice %18 {offsets = [0, 24], sizes = [16, 8], strides = [1, 1]} : vector<16x32xf32> to vector<16x8xf32>
    %70 = vector.extract_strided_slice %19 {offsets = [0, 24], sizes = [16, 8], strides = [1, 1]} : vector<16x32xf32> to vector<16x8xf32>
    %71 = vector.extract_strided_slice %20 {offsets = [0, 24], sizes = [16, 8], strides = [1, 1]} : vector<16x32xf32> to vector<16x8xf32>
    %cst_21 = arith.constant dense<0.000000e+00> : vector<16x16xf32>
    %72 = tpu.matmul %69, %70, %cst_21 {dimension_numbers = #tpu.dot_dimension_numbers<[1], [1], [0], [0], [0, 0, 1, 0], [], []>} : vector<16x8xf32>, vector<16x8xf32>, vector<16x16xf32> -> vector<16x16xf32>
    %73 = arith.addf %72, %3 : vector<16x16xf32>
    %cst_22 = arith.constant dense<0xFF800000> : vector<16xf32>
    %74 = vector.multi_reduction <maximumf>, %73, %cst_22 [1] : vector<16x16xf32> to vector<16xf32>
    %75 = vector.shape_cast %74 : vector<16xf32> to vector<16x1xf32>
    %76 = vector.broadcast %75 : vector<16x1xf32> to vector<16x16xf32>
    %77 = arith.subf %73, %76 : vector<16x16xf32>
    %78 = math.exp %77 : vector<16x16xf32>
    %cst_23 = arith.constant dense<0.000000e+00> : vector<16xf32>
    %79 = vector.multi_reduction <add>, %78, %cst_23 [1] : vector<16x16xf32> to vector<16xf32>
    %80 = vector.shape_cast %79 : vector<16xf32> to vector<16x1xf32>
    %81 = tpu.reciprocal %80 {approx = true} : vector<16x1xf32> -> vector<16x1xf32>
    %82 = vector.broadcast %81 : vector<16x1xf32> to vector<16x16xf32>
    %83 = arith.mulf %78, %82 : vector<16x16xf32>
    %cst_24 = arith.constant dense<0.000000e+00> : vector<16x8xf32>
    %84 = tpu.matmul %83, %71, %cst_24 {dimension_numbers = #tpu.dot_dimension_numbers<[1], [0], [0], [1], [0, 0, 1, 1], [], []>} : vector<16x16xf32>, vector<16x8xf32>, vector<16x8xf32> -> vector<16x8xf32>
    %85 = tpu.concatenate %36, %52, %68, %84 in 1 : vector<16x8xf32>, vector<16x8xf32>, vector<16x8xf32>, vector<16x8xf32> -> vector<16x32xf32>
    %c40 = arith.constant 40 : index
    %c0_25 = arith.constant 0 : index
    %86 = vector.load %arg1[%c40, %c0_25] : memref<184x128xf32, #tpu.memory_space<vmem>>, vector<32x32xf32>
    %cst_26 = arith.constant dense<0.000000e+00> : vector<16x32xf32>
    %87 = tpu.matmul %85, %86, %cst_26 {dimension_numbers = #tpu.dot_dimension_numbers<[1], [0], [0], [1], [0, 0, 1, 1], [], []>} : vector<16x32xf32>, vector<32x32xf32>, vector<16x32xf32> -> vector<16x32xf32>
    %88 = arith.addf %0, %87 : vector<16x32xf32>
    %89 = arith.mulf %88, %88 : vector<16x32xf32>
    %cst_27 = arith.constant dense<0.000000e+00> : vector<16xf32>
    %90 = vector.multi_reduction <add>, %89, %cst_27 [1] : vector<16x32xf32> to vector<16xf32>
    %91 = vector.shape_cast %90 : vector<16xf32> to vector<16x1xf32>
    %cst_28 = arith.constant 3.200000e+01 : f32
    %92 = vector.broadcast %cst_28 : f32 to vector<16x1xf32>
    %93 = arith.divf %91, %92 : vector<16x1xf32>
    %cst_29 = arith.constant 9.99999997E-7 : f32
    %94 = vector.broadcast %cst_29 : f32 to vector<16x1xf32>
    %95 = arith.addf %93, %94 : vector<16x1xf32>
    %96 = math.rsqrt %95 : vector<16x1xf32>
    %97 = vector.broadcast %96 : vector<16x1xf32> to vector<16x32xf32>
    %98 = arith.mulf %88, %97 : vector<16x32xf32>
    %99 = vector.broadcast %2 : vector<1x32xf32> to vector<16x32xf32>
    %100 = arith.mulf %98, %99 : vector<16x32xf32>
    %c72 = arith.constant 72 : index
    %c0_30 = arith.constant 0 : index
    %101 = vector.load %arg1[%c72, %c0_30] : memref<184x128xf32, #tpu.memory_space<vmem>>, vector<32x64xf32>
    %cst_31 = arith.constant dense<0.000000e+00> : vector<16x64xf32>
    %102 = tpu.matmul %100, %101, %cst_31 {dimension_numbers = #tpu.dot_dimension_numbers<[1], [0], [0], [1], [0, 0, 1, 1], [], []>} : vector<16x32xf32>, vector<32x64xf32>, vector<16x64xf32> -> vector<16x64xf32>
    %cst_32 = arith.constant 0.000000e+00 : f32
    %103 = vector.broadcast %cst_32 : f32 to vector<16x64xf32>
    %104 = arith.maximumf %102, %103 : vector<16x64xf32>
    %c104 = arith.constant 104 : index
    %c0_33 = arith.constant 0 : index
    %105 = vector.load %arg1[%c104, %c0_33] : memref<184x128xf32, #tpu.memory_space<vmem>>, vector<64x32xf32>
    %cst_34 = arith.constant dense<0.000000e+00> : vector<16x32xf32>
    %106 = tpu.matmul %104, %105, %cst_34 {dimension_numbers = #tpu.dot_dimension_numbers<[1], [0], [0], [1], [0, 0, 1, 1], [], []>} : vector<16x64xf32>, vector<64x32xf32>, vector<16x32xf32> -> vector<16x32xf32>
    %107 = arith.addf %88, %106 : vector<16x32xf32>
    %c0_35 = arith.constant 0 : index
    %c0_36 = arith.constant 0 : index
    %108 = vector.load %arg2[%c0_35, %c0_36] : memref<16x32xf32, #tpu.memory_space<vmem>>, vector<16x32xf32>
    tpu.vector_store %arg2[%c0_35, %c0_36], %107 {strides = array<i32>} : memref<16x32xf32, #tpu.memory_space<vmem>>, vector<16x32xf32>,
    return
  }
}

</mosaic_0001>

<bundles_post_ra>
// kernel: mta_block2_forward.1
= control target key start
LH: loop header
LB: loop body
LE: loop exit
PB: predicated region body
PF: predicated region fallthrough
CT: control target
= control target key end

     0   :  { %7 = vsyncpa [#allocation3], 0  ;;  %s1968_s0 = inlined_call_operand.hbm [shape: f32[16,32], index: 0, kind: input, shape index: {}]   ;;  %s1969_s1 = inlined_call_operand.hbm [shape: f32[184,128], index: 1, kind: input, shape index: {}]   ;;  %s1970_s2 = inlined_call_operand.hbm [shape: f32[16,32], index: 2, kind: output, shape index: {}]  }
   0x1   :  { %8 = vsyncpa [#allocation6], 0 }
   0x2   :  { %9 = vsyncpa [#allocation4], 0  ;;  %s1746_s9 = smov [#allocation2]   ;;  %s1674_s13 = scalar_lea.hbm %s1968_s0, 256 }
   0x3   :  { %s15_s10 = sshll.u32 %s1746_s9, 4  ;;  %p1675_p0 = scmp.ne.s32.totalorder %s1968_s0, %s1674_s13  ;;  %s16_s10 = int_to_ptr.vmem [resolvable:$true] %s15_s10 }
   0x4   :  { %p1678_p1 = scmp.lt.u32.totalorder %s1674_s13, %s1968_s0 }
   0x6   :  { %p1680_p2 = pnand %p1678_p1, %p1675_p0 }
   0x8   :  { %1683 = shalt.err (!%p1680_p2)
}
   0x9   :  { %s1684_s18 = scalar_lea.vmem %s16_s10, 256  ;;  %p1689_p4 = scmp.lt.s32.totalorder %s16_s10, %s16_s10 }
   0xa   :  { %p1685_p3 = scmp.ne.s32.totalorder %s16_s10, %s1684_s18  ;;  %p1690_p5 = scmp.lt.s32.totalorder %s1684_s18, %s1684_s18 }
   0xc   :  { %p1691_p6 = por %p1690_p5, %p1689_p4 }
   0xe   :  { %p1692_p7 = pnand %p1691_p6, %p1685_p3 }
  0x10   :  { %1695 = shalt.err (!%p1692_p7)
}
  0x11   :  { %s1747_s19 = smov 128   ;;  %s1748_s20 = smov 8  }
  0x12   :  { %21 = dma.hbm_to_vmem [thread:$0]  %s1968_s0, 256, %s16_s10, [#allocation3], %s1747_s19, %s1747_s19, %s1748_s20  }
  0x13   :  { %s1749_s23 = smov [#allocation5]   ;;  %s1696_s27 = scalar_lea.hbm %s1969_s1, 2944 }
  0x14   :  { %s27_s24 = sshll.u32 %s1749_s23, 4  ;;  %p1697_p8 = scmp.ne.s32.totalorder %s1969_s1, %s1696_s27  ;;  %s28_s24 = int_to_ptr.vmem [resolvable:$true] %s27_s24 }
  0x15   :  { %p1700_p9 = scmp.lt.u32.totalorder %s1696_s27, %s1969_s1 }
  0x17   :  { %p1702_p10 = pnand %p1700_p9, %p1697_p8 }
  0x19   :  { %1705 = shalt.err (!%p1702_p10)
}
  0x1a   :  { %s1706_s4 = scalar_lea.vmem %s28_s24, 2944  ;;  %p1711_p12 = scmp.lt.s32.totalorder %s28_s24, %s28_s24 }
  0x1b   :  { %p1707_p11 = scmp.ne.s32.totalorder %s28_s24, %s1706_s4  ;;  %p1712_p13 = scmp.lt.s32.totalorder %s1706_s4, %s1706_s4 }
  0x1d   :  { %p1713_p0 = por %p1712_p13, %p1711_p12 }
  0x1f   :  { %p1714_p1 = pnand %p1713_p0, %p1707_p11 }
  0x21   :  { %1717 = shalt.err (!%p1714_p1)
}
  0x22   :  { %33 = dma.hbm_to_vmem [thread:$0]  %s1969_s1, 2944, %s28_s24, [#allocation6], %s1747_s19, %s1747_s19, %s1748_s20  }
  0x23   :  { %1740 = dma.done.wait [#allocation3], 256  }
  0x24   :  { %1741 = vsyncadd [#allocation3], 4294967040 }
  0x25   :  { %1742 = dma.done.wait [#allocation6], 2944  }
  0x26   :  { %1743 = vsyncadd [#allocation6], 4294964352  ;;  %v1809_v0 = vld [vmem:[#allocation2] sm:$0xff]  ;;  %vm48_vm0 = vcmask 261120   ;;  %v1811_v1 = vld [vmem:[#allocation2 + $0x8] sm:$0xff]  ;;  %vm161_vm1 = vcmask 64512  }
  0x27   :  { %v46_v2 = vmul.f32 %v1809_v0, %v1809_v0  ;;  %v47_v3 = vmul.f32 %v1811_v1, %v1811_v1  ;;  %v70_v6 = vld [vmem:[#allocation5 + $0x8] sm:$0xff]  ;;  %v71_v7 = vld [vmem:[#allocation5 + $0x10] sm:$0xff]  ;;  %v72_v8 = vld [vmem:[#allocation5 + $0x18] sm:$0xff]  ;;  %s1750_s1 = smov 120   ;;  %s1751_s6 = smov 96   ;;  %vm245_vm3 = vcmask 130048  }
  0x28   :  { %v1496_v9 = vpack.c.bf16 %v71_v7, %v70_v6  ;;  %v73_v10 = vld [vmem:[#allocation5 + $0x20] sm:$0xff]  ;;  %s1752_s7 = smov 88   ;;  %vm1839_vm2 = vmpackc.low %vm161_vm1, %vm161_vm1  ;;  %v1855_v39 = vld [vmem:[#allocation5 + $0xb0] sm:$0xff]  ;;  %s1753_s8 = smov 56   ;;  %vm983_vm4 = vcmask 195584   ;;  %vm1190_vm5 = vcmask 523264  }
  0x29   :  { %v49_v4 = vsel %vm48_vm0, %v46_v2, 0.0  ;;  %v52_v5 = vsel %vm48_vm0, %v47_v3, 0.0  ;;  %v1500_v11 = vpack.c.bf16 %v73_v10, %v72_v8  ;;  %v1294_v19 = vld [vmem:[#allocation5] ss:$0 sm:$0xff]  ;;  %v1857_v40 = vld [vmem:[#allocation5 + $0xa8] sm:$0xff]  ;;  %s1754_s9 = smov 64  }
  0x2a   :  { %50 = vadd.xlane.f32.xlu0 %v49_v4  ;;  %1497 = vmatprep.subr.bf16.mxu1 %v1496_v9  ;;  %s1755_s10 = smov 80   ;;  %s1756_s11 = smov 112  }
  0x2b   :  { %1499 = vmatpush3.bf16.msra.mxu1 %v1496_v9  ;;  %s1757_s12 = smov 48   ;;  %s1758_s13 = smov 104  }
  0x2c   :  { %1501 = vmatprep.subr.bf16.mxu1 %v1500_v11  ;;  %s1759_s14 = smov 72   ;;  %s1760_s15 = smov 40  }
  0x2d   :  { %s1761_s16 = smov 16   ;;  %s1762_s17 = smov 24  }
  0x2e   :  { %53 = vadd.xlane.f32.xlu0 %v52_v5  ;;  %s1763_s18 = smov [#allocation7]  }
  0x2f   :  { %1503 = vmatpush3.bf16.msra.mxu1 %v1500_v11  ;;  %s1281_s21 = sshll.u32 %s1763_s18, 4  ;;  %s1282_s21 = int_to_ptr.vmem [resolvable:$true] %s1281_s21 }
  0x30   :  { %s1718_s22 = scalar_lea.vmem %s1282_s21, 256  ;;  %p1723_p3 = scmp.lt.s32.totalorder %s1282_s21, %s1282_s21 }
  0x31   :  { %p1719_p2 = scmp.ne.s32.totalorder %s1282_s21, %s1718_s22  ;;  %p1724_p4 = scmp.lt.s32.totalorder %s1718_s22, %s1718_s22 }
  0x33   :  { %p1725_p5 = por %p1724_p4, %p1723_p3 }
  0x35   :  { %p1726_p6 = pnand %p1725_p5, %p1719_p2 }
  0xb7   :  { %v51_v12 = vpop.xlane.xlu0 %50 }
  0xb8   :  { %v56_v13 = vmul.f32 0.03125, %v51_v12 }
  0xba   :  { %v58_v14 = vadd.f32 1e-06, %v56_v13 }
  0xbb   :  { %v54_v15 = vpop.xlane.xlu0 %53 }
  0xbc   :  { %1634 = vrsqrt.f32 %v58_v14  ;;  %v57_v16 = vmul.f32 0.03125, %v54_v15 }
  0xbe   :  { %v59_v17 = vadd.f32 1e-06, %v57_v16 }
  0xc0   :  { %1636 = vrsqrt.f32 %v59_v17 }
  0xc6   :  { %v1635_v18 = vpop.eup %1634 }
  0xc7   :  { %v62_v20 = vmul.f32 %v1635_v18, %v1809_v0 }
  0xc9   :  { %v68_v21 = vmul.f32 %v1294_v19, %v62_v20 }
  0xca   :  { %v1637_v22 = vpop.eup %1636 }
  0xcb   :  { %v63_v23 = vmul.f32 %v1637_v22, %v1811_v1  ;;  %1396 = vmatprep.mubr.msk.f32.mxu1 %vm48_vm0, %v68_v21 }
  0xcd   :  { %v69_v24 = vmul.f32 %v1294_v19, %v63_v23 }
  0xcf   :  { %1397 = vmatmul.mubr.msk.f32.vlgmr.msra.gmra.mrb[0].mxu1 %vm48_vm0, %v69_v24 }
 0x1a2   :  { %v1823_v25 = vpop.f32.mrb[0].mxu1 }
 0x1a3   :  { %v1825_v26 = vpop.f32.mrb[1].mxu1 }
 0x1a4   :  { %355 = vrot.lane.b32.xlu0 %v1825_v26, %s1750_s1  ;;  %1403 = vmatprep.mubr.msk.f32.mxu1 %vm161_vm1, %v1825_v26  ;;  %v1832_v27 = vpack.i.bf16 %v1823_v25, %v1825_v26 }
 0x1a6   :  { %1595 = vrot.lane.b32.xlu1 %v1832_v27, %s1751_s6 }
 0x1aa   :  { %1600 = vrot.lane.b32.xlu1 %v1832_v27, %s1752_s7 }
 0x1ae   :  { %357 = vrot.lane.b32.xlu1 %v1823_v25, %s1750_s1 }
 0x216   :  { %v356_v37 = vpop.permute.xlu0 %355 }
 0x218   :  { %v1596_v28 = vpop.permute.xlu1 %1595 }
 0x219   :  { %v1598_v29 = vunpack.i.h.bf16 %v1596_v28  ;;  %v1597_v30 = vunpack.i.l.bf16 %v1596_v28 }
 0x21b   :  { %v1504_v32 = vpack.c.bf16 %v1598_v29, %v1597_v30 }
 0x21c   :  { %v1601_v33 = vpop.permute.xlu1 %1600 }
 0x21d   :  { %v1603_v34 = vunpack.i.h.bf16 %v1601_v33  ;;  %v1602_v35 = vunpack.i.l.bf16 %v1601_v33  ;;  %1506 = vmatprep.subr.msk.bf16.mxu1 %vm1839_vm2, %v1504_v32 }
 0x21e   :  { %1509 = vmatpush3.bf16.xpose.msk.msra.mxu1 %vm1839_vm2, %v1504_v32 }
 0x21f   :  { %v1514_v36 = vpack.c.bf16 %v1603_v34, %v1602_v35 }
 0x220   :  { %v358_v38 = vpop.permute.xlu1 %357 }
 0x221   :  { %1516 = vmatprep.subr.msk.bf16.mxu1 %vm1839_vm2, %v1514_v36 }
 0x225   :  { %1404 = vmatmul.mubr.msk.f32.vlgmr.msra.gmra.mrb[2].mxu1 %vm161_vm1, %v1823_v25 }
 0x226   :  { %1519 = vmatpush3.bf16.xpose.msk.msra.mxu1 %vm1839_vm2, %v1514_v36  ;;  %1417 = vmatprep.mubr.msk.f32.mxu1 %vm161_vm1, %v356_v37 }
 0x22d   :  { %1418 = vmatmul.mubr.msk.f32.vlgmr.msra.gmra.mrb[4].mxu1 %vm161_vm1, %v358_v38 }
 0x2f8   :  { %v1405_v41 = vpop.f32.mrb[2].mxu1 }
 0x2f9   :  { %v242_v42 = vadd.f32 %v1405_v41, %v1855_v39  ;;  %v236_v43 = vpop.f32.mrb[3].mxu1 }
 0x2fa   :  { %v237_v44 = vadd.f32 %v236_v43, %v1857_v40 }
 0x2fb   :  { %v249_v45 = vsel %vm245_vm3, %v242_v42, -inf }
 0x2fc   :  { %250 = vmax.xlane.f32.xlu0 %v249_v45  ;;  %v246_v46 = vsel %vm245_vm3, %v237_v44, -inf }
 0x2fd   :  { %247 = vmax.xlane.f32.xlu1 %v246_v46 }
 0x300   :  { %v1419_v47 = vpop.f32.mrb[4].mxu1 }
 0x301   :  { %v437_v48 = vpop.f32.mrb[5].mxu1  ;;  %v443_v50 = vadd.f32 %v1419_v47, %v1855_v39 }
 0x302   :  { %v438_v49 = vadd.f32 %v437_v48, %v1857_v40 }
 0x303   :  { %v449_v52 = vsel %vm245_vm3, %v443_v50, -inf }
 0x304   :  { %v446_v51 = vsel %vm245_vm3, %v438_v49, -inf }
 0x305   :  { %447 = vmax.xlane.f32.xlu1 %v446_v51 }
 0x309   :  { %450 = vmax.xlane.f32.xlu1 %v449_v52 }
 0x389   :  { %v251_v53 = vpop.xlane.xlu0 %250 }
 0x38a   :  { %v253_v54 = vsub.f32 %v242_v42, %v251_v53  ;;  %v248_v55 = vpop.xlane.xlu1 %247 }
 0x38b   :  { %v252_v56 = vsub.f32 %v237_v44, %v248_v55 }
 0x38c   :  { %v256_v57 = vmul.f32 1.442695, %v253_v54 }
 0x38d   :  { %v254_v58 = vmul.f32 1.442695, %v252_v56 }
 0x38e   :  { %1638 = vpow2.f32 %v256_v57 }
 0x38f   :  { %1640 = vpow2.f32 %v254_v58 }
 0x392   :  { %v448_v59 = vpop.xlane.xlu1 %447 }
 0x393   :  { %v452_v60 = vsub.f32 %v438_v49, %v448_v59 }
 0x395   :  { %v454_v61 = vmul.f32 1.442695, %v452_v60 }
 0x396   :  { %v451_v62 = vpop.xlane.xlu1 %450 }
 0x397   :  { %1642 = vpow2.f32 %v454_v61  ;;  %v453_v63 = vsub.f32 %v443_v50, %v451_v62 }
 0x398   :  { %v1639_v2 = vpop.eup %1638 }
 0x399   :  { %v456_v3 = vmul.f32 1.442695, %v453_v63  ;;  %v261_v4 = vsel %vm245_vm3, %v1639_v2, 0.0  ;;  %v1641_v5 = vpop.eup %1640 }
 0x39a   :  { %262 = vadd.xlane.f32.xlu1 %v261_v4  ;;  %v258_v6 = vsel %vm245_vm3, %v1641_v5, 0.0 }
 0x39b   :  { %1644 = vpow2.f32 %v456_v3 }
 0x39e   :  { %259 = vadd.xlane.f32.xlu1 %v258_v6 }
 0x3a1   :  { %v1643_v7 = vpop.eup %1642 }
 0x3a2   :  { %v458_v8 = vsel %vm245_vm3, %v1643_v7, 0.0 }
 0x3a3   :  { %459 = vadd.xlane.f32.xlu0 %v458_v8 }
 0x3a5   :  { %v1645_v9 = vpop.eup %1644 }
 0x3a6   :  { %v461_v10 = vsel %vm245_vm3, %v1645_v9, 0.0 }
 0x3a7   :  { %462 = vadd.xlane.f32.xlu1 %v461_v10 }
 0x3b8   :  { %1610 = vrot.lane.b32.xlu1 %v1832_v27, %s1753_s8 }
 0x3b9   :  { %1605 = vrot.lane.b32.xlu0 %v1832_v27, %s1754_s9 }
 0x3bc   :  { %1615 = vrot.lane.b32.xlu1 %v1832_v27, %s1755_s10 }
 0x3bd   :  { %555 = vrot.lane.b32.xlu0 %v1825_v26, %s1756_s11 }
 0x3c0   :  { %557 = vrot.lane.b32.xlu1 %v1823_v25, %s1756_s11 }
 0x427   :  { %v263_v11 = vpop.xlane.xlu1 %262 }
 0x42b   :  { %v260_v12 = vpop.xlane.xlu1 %259 }
 0x42c   :  { %1646 = vrcp.f32 %v260_v12 }
 0x42d   :  { %1648 = vrcp.f32 %v263_v11 }
 0x430   :  { %v460_v13 = vpop.xlane.xlu0 %459 }
 0x431   :  { %1650 = vrcp.f32 %v460_v13 }
 0x434   :  { %v1606_v14 = vpop.permute.xlu0 %1605  ;;  %v463_v15 = vpop.xlane.xlu1 %462 }
 0x435   :  { %v1608_v16 = vunpack.i.h.bf16 %v1606_v14  ;;  %v1607_v17 = vunpack.i.l.bf16 %v1606_v14  ;;  %1652 = vrcp.f32 %v463_v15 }
 0x436   :  { %v1647_v18 = vpop.eup %1646 }
 0x437   :  { %v1510_v19 = vpack.c.bf16 %v1608_v16, %v1607_v17  ;;  %v266_v20 = vmul.f32 %v1647_v18, %v1641_v5  ;;  %v1649_v21 = vpop.eup %1648 }
 0x438   :  { %v1611_v22 = vpop.permute.xlu1 %1610  ;;  %v267_v30 = vmul.f32 %v1649_v21, %v1639_v2  ;;  %v556_v41 = vpop.permute.xlu0 %555 }
 0x439   :  { %v1613_v23 = vunpack.i.h.bf16 %v1611_v22  ;;  %v1612_v24 = vunpack.i.l.bf16 %v1611_v22  ;;  %1511 = vmatprep.subr.bf16.mxu0 %v1510_v19  ;;  %1410 = vmatprep.mubr.msk.f32.mxu0 %vm245_vm3, %v266_v20 }
 0x43a   :  { %1513 = vmatpush3.bf16.msra.mxu0 %v1510_v19 }
 0x43b   :  { %v1651_v28 = vpop.eup %1650  ;;  %v1520_v29 = vpack.c.bf16 %v1613_v23, %v1612_v24 }
 0x43c   :  { %v1616_v32 = vpop.permute.xlu1 %1615  ;;  %v466_v33 = vmul.f32 %v1651_v28, %v1643_v7 }
 0x43d   :  { %v1618_v34 = vunpack.i.h.bf16 %v1616_v32  ;;  %v1617_v35 = vunpack.i.l.bf16 %v1616_v32  ;;  %1411 = vmatmul.mubr.msk.f32.vlgmr.msra.gmra.mrb[0].mxu0 %vm245_vm3, %v267_v30  ;;  %1521 = vmatprep.subr.bf16.mxu0 %v1520_v29 }
 0x43e   :  { %1523 = vmatpush3.bf16.msra.mxu0 %v1520_v29  ;;  %1424 = vmatprep.mubr.msk.f32.mxu0 %vm245_vm3, %v466_v33 }
 0x43f   :  { %v1653_v36 = vpop.eup %1652  ;;  %v1524_v37 = vpack.c.bf16 %v1618_v34, %v1617_v35 }
 0x440   :  { %v467_v38 = vmul.f32 %v1653_v36, %v1645_v9  ;;  %v558_v42 = vpop.permute.xlu1 %557 }
 0x441   :  { %1526 = vmatprep.subr.msk.bf16.mxu0 %vm1839_vm2, %v1524_v37 }
 0x442   :  { %1425 = vmatmul.mubr.msk.f32.vlgmr.msra.gmra.mrb[2].mxu0 %vm245_vm3, %v467_v38 }
 0x443   :  { %1431 = vmatprep.mubr.msk.f32.mxu0 %vm161_vm1, %v556_v41 }
 0x447   :  { %1529 = vmatpush3.bf16.xpose.msk.msra.mxu0 %vm1839_vm2, %v1524_v37 }
 0x44e   :  { %1432 = vmatmul.mubr.msk.f32.vlgmr.msra.gmra.mrb[4].mxu0 %vm161_vm1, %v558_v42 }
 0x510   :  { %v1886_v43 = vpop.f32.mrb[0].mxu0 }
 0x511   :  { %v1888_v44 = vpop.f32.mrb[1].mxu0 }
 0x515   :  { %v1890_v45 = vpop.f32.mrb[2].mxu0 }
 0x516   :  { %v1892_v46 = vpop.f32.mrb[3].mxu0 }
 0x521   :  { %v1433_v47 = vpop.f32.mrb[4].mxu0 }
 0x522   :  { %v643_v48 = vadd.f32 %v1433_v47, %v1855_v39  ;;  %v637_v49 = vpop.f32.mrb[5].mxu0 }
 0x523   :  { %v638_v50 = vadd.f32 %v637_v49, %v1857_v40  ;;  %v987_v49 = vld [vmem:[#allocation5 + $0x30] sm:$0xff] }
 0x524   :  { %v649_v51 = vsel %vm245_vm3, %v643_v48, -inf }
 0x525   :  { %650 = vmax.xlane.f32.xlu1 %v649_v51  ;;  %v646_v52 = vsel %vm245_vm3, %v638_v50, -inf }
 0x526   :  { %647 = vmax.xlane.f32.xlu0 %v646_v52  ;;  %v989_v52 = vld [vmem:[#allocation5 + $0x40] sm:$0xff] }
 0x536   :  { %1620 = vrot.lane.b32.xlu1 %v1832_v27, %s1757_s12 }
 0x53a   :  { %755 = vrot.lane.b32.xlu1 %v1825_v26, %s1758_s13 }
 0x53e   :  { %757 = vrot.lane.b32.xlu1 %v1823_v25, %s1758_s13 }
 0x5b2   :  { %v651_v53 = vpop.xlane.xlu1 %650 }
 0x5b3   :  { %v653_v54 = vsub.f32 %v643_v48, %v651_v53  ;;  %v648_v55 = vpop.xlane.xlu0 %647  ;;  %v986_v48 = vld [vmem:[#allocation5 + $0x28] sm:$0xff] }
 0x5b4   :  { %v652_v56 = vsub.f32 %v638_v50, %v648_v55  ;;  %v988_v50 = vld [vmem:[#allocation5 + $0x38] sm:$0xff]  ;;  %v1544_v51 = vpack.c.bf16 %v987_v49, %v986_v48 }
 0x5b5   :  { %v656_v57 = vmul.f32 1.442695, %v653_v54  ;;  %v1548_v53 = vpack.c.bf16 %v989_v52, %v988_v50 }
 0x5b6   :  { %v654_v58 = vmul.f32 1.442695, %v652_v56  ;;  %v1621_v59 = vpop.permute.xlu1 %1620 }
 0x5b7   :  { %1654 = vpow2.f32 %v656_v57  ;;  %v1623_v60 = vunpack.i.h.bf16 %v1621_v59  ;;  %v1622_v61 = vunpack.i.l.bf16 %v1621_v59 }
 0x5b8   :  { %1656 = vpow2.f32 %v654_v58 }
 0x5b9   :  { %v1530_v62 = vpack.c.bf16 %v1623_v60, %v1622_v61 }
 0x5ba   :  { %v756_v13 = vpop.permute.xlu1 %755 }
 0x5bb   :  { %1531 = vmatprep.subr.bf16.mxu1 %v1530_v62 }
 0x5bc   :  { %1533 = vmatpush3.bf16.msra.mxu1 %v1530_v62 }
 0x5be   :  { %v758_v14 = vpop.permute.xlu1 %757 }
 0x5c1   :  { %v1655_v63 = vpop.eup %1654 }
 0x5c2   :  { %v661_v2 = vsel %vm245_vm3, %v1655_v63, 0.0  ;;  %v1657_v26 = vpop.eup %1656 }
 0x5c3   :  { %662 = vadd.xlane.f32.xlu0 %v661_v2  ;;  %v658_v25 = vsel %vm245_vm3, %v1657_v26, 0.0 }
 0x5c7   :  { %659 = vadd.xlane.f32.xlu0 %v658_v25 }
 0x5dd   :  { %1625 = vrot.lane.b32.xlu0 %v1832_v27, %s1759_s14 }
 0x650   :  { %v663_v3 = vpop.xlane.xlu0 %662 }
 0x651   :  { %1658 = vrcp.f32 %v663_v3 }
 0x654   :  { %v660_v4 = vpop.xlane.xlu0 %659 }
 0x655   :  { %1660 = vrcp.f32 %v660_v4 }
 0x658   :  { %v1626_v5 = vpop.permute.xlu0 %1625 }
 0x659   :  { %v1628_v6 = vunpack.i.h.bf16 %v1626_v5  ;;  %v1627_v7 = vunpack.i.l.bf16 %v1626_v5 }
 0x65b   :  { %v1534_v8 = vpack.c.bf16 %v1628_v6, %v1627_v7  ;;  %v1659_v9 = vpop.eup %1658 }
 0x65c   :  { %v667_v12 = vmul.f32 %v1659_v9, %v1655_v63  ;;  %v1095_v9 = vld [vmem:[#allocation5 + $0x48] sm:$0xff] }
 0x65d   :  { %1536 = vmatprep.subr.msk.bf16.mxu1 %vm1839_vm2, %v1534_v8 }
 0x65f   :  { %v1661_v10 = vpop.eup %1660 }
 0x660   :  { %v666_v11 = vmul.f32 %v1661_v10, %v1657_v26  ;;  %v1096_v10 = vld [vmem:[#allocation5 + $0x50] sm:$0xff] }
 0x662   :  { %1438 = vmatprep.mubr.msk.f32.mxu1 %vm245_vm3, %v666_v11  ;;  %v1552_v11 = vpack.c.bf16 %v1096_v10, %v1095_v9 }
 0x663   :  { %1439 = vmatmul.mubr.msk.f32.vlgmr.msra.gmra.mrb[6].mxu1 %vm245_vm3, %v667_v12  ;;  %v1098_v12 = vld [vmem:[#allocation5 + $0x60] sm:$0xff] }
 0x664   :  { %1539 = vmatpush3.bf16.xpose.msk.msra.mxu1 %vm1839_vm2, %v1534_v8  ;;  %1445 = vmatprep.mubr.msk.f32.mxu1 %vm161_vm1, %v756_v13 }
 0x665   :  { %1553 = vmatprep.subr.bf16.mxu1 %v1552_v11 }
 0x66b   :  { %1446 = vmatmul.mubr.msk.f32.vlgmr.msra.gmra.mrb[8].mxu1 %vm161_vm1, %v758_v14  ;;  %v1183_v14 = vld [vmem:[#allocation5 + $0x70] sm:$0xff] }
 0x66c   :  { %1555 = vmatpush3.bf16.msra.mxu1 %v1552_v11 }
 0x736   :  { %v1440_v15 = vpop.f32.mrb[6].mxu1 }
 0x737   :  { %v746_v16 = vpop.f32.mrb[7].mxu1 }
 0x73e   :  { %v1447_v17 = vpop.f32.mrb[8].mxu1 }
 0x73f   :  { %v843_v18 = vadd.f32 %v1447_v17, %v1855_v39  ;;  %v837_v19 = vpop.f32.mrb[9].mxu1  ;;  %v1185_v17 = vld [vmem:[#allocation5 + $0x80] sm:$0xff] }
 0x740   :  { %v838_v20 = vadd.f32 %v837_v19, %v1857_v40  ;;  %v1186_v19 = vld [vmem:[#allocation5 + $0x88] sm:$0xff] }
 0x741   :  { %v849_v21 = vsel %vm245_vm3, %v843_v18, -inf }
 0x742   :  { %850 = vmax.xlane.f32.xlu1 %v849_v21  ;;  %v846_v22 = vsel %vm245_vm3, %v838_v20, -inf }
 0x743   :  { %847 = vmax.xlane.f32.xlu0 %v846_v22 }
 0x753   :  { %1630 = vrot.lane.b32.xlu1 %v1832_v27, %s1760_s15 }
 0x757   :  { %959 = vrot.lane.b32.xlu1 %v1890_v45, %s1748_s20 }
 0x75b   :  { %965 = vrot.lane.b32.xlu1 %v746_v16, %s1761_s16 }
 0x7cf   :  { %v851_v31 = vpop.xlane.xlu1 %850 }
 0x7d0   :  { %v853_v23 = vsub.f32 %v843_v18, %v851_v31  ;;  %v848_v39 = vpop.xlane.xlu0 %847 }
 0x7d1   :  { %v852_v24 = vsub.f32 %v838_v20, %v848_v39  ;;  %v1187_v20 = vld [vmem:[#allocation5 + $0x90] sm:$0xff] }
 0x7d2   :  { %v856_v28 = vmul.f32 1.442695, %v853_v23  ;;  %v1568_v21 = vpack.c.bf16 %v1187_v20, %v1186_v19 }
 0x7d3   :  { %v854_v40 = vmul.f32 1.442695, %v852_v24  ;;  %v1631_v29 = vpop.permute.xlu1 %1630 }
 0x7d4   :  { %v1633_v30 = vunpack.i.h.bf16 %v1631_v29  ;;  %v1632_v32 = vunpack.i.l.bf16 %v1631_v29 }
 0x7d5   :  { %1662 = vpow2.f32 %v854_v40 }
 0x7d6   :  { %v1540_v33 = vpack.c.bf16 %v1633_v30, %v1632_v32  ;;  %1664 = vpow2.f32 %v856_v28  ;;  %v1323_v30 = vld [vmem:[#allocation5 + $0x1] ss:$0 sm:$0xff] }
 0x7d7   :  { %v960_v56 = vpop.permute.xlu1 %959 }
 0x7d8   :  { %1541 = vmatprep.subr.bf16.mxu0 %v1540_v33  ;;  %v980_v61 = vsel %vm161_vm1, %v1886_v43, %v960_v56 }
 0x7d9   :  { %1543 = vmatpush3.bf16.msra.mxu0 %v1540_v33 }
 0x7da   :  { %1545 = vmatprep.subr.bf16.mxu0 %v1544_v51 }
 0x7db   :  { %v966_v58 = vpop.permute.xlu1 %965 }
 0x7df   :  { %v1663_v27 = vpop.eup %1662 }
 0x7e0   :  { %v858_v34 = vsel %vm245_vm3, %v1663_v27, 0.0  ;;  %v1665_v35 = vpop.eup %1664 }
 0x7e1   :  { %859 = vadd.xlane.f32.xlu0 %v858_v34  ;;  %v861_v36 = vsel %vm245_vm3, %v1665_v35, 0.0 }
 0x7e5   :  { %862 = vadd.xlane.f32.xlu0 %v861_v36  ;;  %v1189_v36 = vld [vmem:[#allocation5 + $0xa0] sm:$0xff] }
 0x7fb   :  { %957 = vrot.lane.b32.xlu0 %v1892_v46, %s1748_s20 }
 0x7ff   :  { %967 = vrot.lane.b32.xlu0 %v1440_v15, %s1761_s16  ;;  %v1184_v15 = vld [vmem:[#allocation5 + $0x78] sm:$0xff] }
 0x800   :  { %v1564_v18 = vpack.c.bf16 %v1185_v17, %v1184_v15 }
 0x86e   :  { %v860_v37 = vpop.xlane.xlu0 %859 }
 0x86f   :  { %1666 = vrcp.f32 %v860_v37 }
 0x872   :  { %v863_v38 = vpop.xlane.xlu0 %862 }
 0x873   :  { %1668 = vrcp.f32 %v863_v38 }
 0x876   :  { %v958_v55 = vpop.permute.xlu0 %957 }
 0x877   :  { %v979_v59 = vsel %vm161_vm1, %v1888_v44, %v958_v55 }
 0x878   :  { %v981_v63 = vsel %vm245_vm3, %v979_v59, %v966_v58 }
 0x879   :  { %v1667_v41 = vpop.eup %1666 }
 0x87a   :  { %v866_v42 = vmul.f32 %v1667_v41, %v1663_v27  ;;  %v968_v57 = vpop.permute.xlu0 %967 }
 0x87b   :  { %v982_v2 = vsel %vm245_vm3, %v980_v61, %v968_v57 }
 0x87c   :  { %1452 = vmatprep.mubr.msk.f32.mxu0 %vm245_vm3, %v866_v42 }
 0x87d   :  { %v1669_v45 = vpop.eup %1668 }
 0x87e   :  { %v867_v47 = vmul.f32 %v1669_v45, %v1665_v35  ;;  %v1188_v35 = vld [vmem:[#allocation5 + $0x98] sm:$0xff] }
 0x87f   :  { %v1572_v37 = vpack.c.bf16 %v1189_v36, %v1188_v35 }
 0x880   :  { %1453 = vmatmul.mubr.msk.f32.vlgmr.msra.gmra.mrb[6].mxu0 %vm245_vm3, %v867_v47 }
 0x881   :  { %1547 = vmatpush3.bf16.msra.mxu0 %v1544_v51 }
 0x882   :  { %1549 = vmatprep.subr.bf16.mxu0 %v1548_v53 }
 0x885   :  { %1551 = vmatpush3.bf16.msra.mxu0 %v1548_v53 }
 0x953   :  { %v1454_v46 = vpop.f32.mrb[6].mxu0 }
 0x954   :  { %975 = vrot.lane.b32.xlu0 %v1454_v46, %s1762_s17  ;;  %v946_v54 = vpop.f32.mrb[7].mxu0 }
 0x955   :  { %973 = vrot.lane.b32.xlu1 %v946_v54, %s1762_s17 }
 0x9c6   :  { %v976_v60 = vpop.permute.xlu0 %975 }
 0x9c7   :  { %v974_v62 = vpop.permute.xlu1 %973  ;;  %v985_v25 = vsel %vm983_vm4, %v982_v2, %v976_v60 }
 0x9c8   :  { %v984_v26 = vsel %vm983_vm4, %v981_v63, %v974_v62 }
 0x9c9   :  { %1463 = vmatprep.mubr.msk.f32.mxu0 %vm48_vm0, %v984_v26 }
 0x9ca   :  { %1464 = vmatmul.mubr.msk.f32.vlgmr.msra.gmra.mrb[8].mxu0 %vm48_vm0, %v985_v25 }
 0xa9d   :  { %v1465_v3 = vpop.f32.mrb[8].mxu0 }
 0xa9e   :  { %v1934_v4 = vadd.f32 %v1465_v3, %v1811_v1  ;;  %v1062_v44 = vpop.f32.mrb[9].mxu0  ;;  %v1097_v1 = vld [vmem:[#allocation5 + $0x58] sm:$0xff] }
 0xa9f   :  { %v1937_v5 = vadd.f32 %v1062_v44, %v1809_v0  ;;  %v1556_v13 = vpack.c.bf16 %v1098_v12, %v1097_v1  ;;  %v1182_v0 = vld [vmem:[#allocation5 + $0x68] sm:$0xff] }
 0xaa0   :  { %v1074_v43 = vmul.f32 %v1934_v4, %v1934_v4  ;;  %v1560_v16 = vpack.c.bf16 %v1183_v14, %v1182_v0 }
 0xaa1   :  { %v1073_v6 = vmul.f32 %v1937_v5, %v1937_v5  ;;  %1557 = vmatprep.subr.bf16.mxu1 %v1556_v13 }
 0xaa2   :  { %v1078_v7 = vsel %vm48_vm0, %v1074_v43, 0.0  ;;  %1559 = vmatpush3.bf16.msra.mxu1 %v1556_v13  ;;  %1561 = vmatprep.subr.bf16.mxu0 %v1560_v16 }
 0xaa3   :  { %1079 = vadd.xlane.f32.xlu0 %v1078_v7  ;;  %v1075_v8 = vsel %vm48_vm0, %v1073_v6, 0.0  ;;  %1563 = vmatpush3.bf16.msra.mxu0 %v1560_v16 }
 0xaa4   :  { %1076 = vadd.xlane.f32.xlu1 %v1075_v8  ;;  %1565 = vmatprep.subr.bf16.mxu0 %v1564_v18 }
 0xaa7   :  { %1567 = vmatpush3.bf16.msra.mxu0 %v1564_v18 }
 0xaa8   :  { %1569 = vmatprep.subr.bf16.mxu0 %v1568_v21 }
 0xaab   :  { %1571 = vmatpush3.bf16.msra.mxu0 %v1568_v21 }
 0xaac   :  { %1573 = vmatprep.subr.bf16.mxu0 %v1572_v37 }
 0xaaf   :  { %1575 = vmatpush3.bf16.msra.mxu0 %v1572_v37 }
 0xb30   :  { %v1080_v22 = vpop.xlane.xlu0 %1079 }
 0xb31   :  { %v1082_v31 = vmul.f32 0.03125, %v1080_v22  ;;  %v1077_v23 = vpop.xlane.xlu1 %1076 }
 0xb32   :  { %v1081_v39 = vmul.f32 0.03125, %v1077_v23 }
 0xb33   :  { %v1084_v24 = vadd.f32 1e-06, %v1082_v31 }
 0xb34   :  { %v1083_v28 = vadd.f32 1e-06, %v1081_v39 }
 0xb35   :  { %1670 = vrsqrt.f32 %v1084_v24 }
 0xb36   :  { %1672 = vrsqrt.f32 %v1083_v28 }
 0xb3f   :  { %v1671_v40 = vpop.eup %1670 }
 0xb40   :  { %v1673_v29 = vpop.eup %1672  ;;  %v1088_v32 = vmul.f32 %v1671_v40, %v1934_v4 }
 0xb41   :  { %v1087_v33 = vmul.f32 %v1673_v29, %v1937_v5 }
 0xb42   :  { %v1094_v34 = vmul.f32 %v1323_v30, %v1088_v32 }
 0xb43   :  { %v1093_v27 = vmul.f32 %v1323_v30, %v1087_v33 }
 0xb45   :  { %1474 = vmatprep.mubr.msk.f32.mxu1 %vm48_vm0, %v1093_v27 }
 0xb46   :  { %1475 = vmatmul.mubr.msk.f32.vlgmr.msra.gmra.mrb[10].mxu1 %vm48_vm0, %v1094_v34 }
 0xc19   :  { %v1476_v38 = vpop.f32.mrb[10].mxu1 }
 0xc1a   :  { %v1171_v41 = vpop.f32.mrb[11].mxu1  ;;  %v1181_v45 = vmax.f32 %v1476_v38, 0.0 }
 0xc1b   :  { %v1180_v42 = vmax.f32 %v1171_v41, 0.0 }
 0xc1d   :  { %1493 = vmatprep.mubr.msk.f32.mxu0 %vm1190_vm5, %v1180_v42 }
 0xc1e   :  { %1494 = vmatmul.mubr.msk.f32.vlgmr.msra.gmra.mrb[10].mxu0 %vm1190_vm5, %v1181_v45 }
 0xcf1   :  { %v1495_v47 = vpop.f32.mrb[10].mxu0 }
 0xcf2   :  { %v1273_v48 = vadd.f32 %v1495_v47, %v1934_v4  ;;  %v1263_v49 = vpop.f32.mrb[11].mxu0 }
 0xcf3   :  { %v1272_v50 = vadd.f32 %v1263_v49, %v1937_v5 }
 0xcf4   :  { %1275 = vst.msk [vmem:[#allocation7 + $0x8] sm:$0xff] %vm48_vm0, %v1273_v48 }
 0xcf5   :  { %1274 = vst.msk [vmem:[#allocation7] sm:$0xff] %vm48_vm0, %v1272_v50 }
 0xcf6   :  { %1729 = shalt.err (!%p1726_p6)
}
 0xcf7   :  { %s1730_s25 = scalar_lea.hbm %s1970_s2, 256 }
 0xcf8   :  { %p1731_p7 = scmp.ne.s32.totalorder %s1970_s2, %s1730_s25  ;;  %p1734_p8 = scmp.lt.u32.totalorder %s1730_s25, %s1970_s2 }
 0xcfa   :  { %p1736_p9 = pnand %p1734_p8, %p1731_p7 }
 0xcfc   :  { %1739 = shalt.err (!%p1736_p9)
}
 0xcfd   :  { %1287 = dma.vmem_to_hbm [thread:$0]  %s1282_s21, 256, %s1970_s2, [#allocation4], %s1747_s19, %s1747_s19, %s1748_s20  }
 0xcfe   :  { %1744 = dma.done.wait [#allocation4], 256  }
 0xcff   :  { %1745 = vsyncadd [#allocation4], 4294967040 }
 0xd00   :  { %1291 = vsyncpa [#allocation3], 1 }
 0xd01   :  { %1292 = vsyncpa [#allocation6], 1 }
 0xd02   :  { %1293 = vsyncpa [#allocation4], 1 }

</bundles_post_ra>
